<compile_context>
chip_gen: v5e
topology: v5e:2x2
jax: 0.10.0
libtpu: 0.0.40
codegen_flags: <defaults>
</compile_context>

<pallas_src>
import functools

import jax
import jax.numpy as jnp
import numpy as np
from jax.experimental import pallas as pl
from jax.experimental.pallas import tpu as pltpu


@functools.partial(jax.jit, static_argnames=("num_labels", "tv", "n_splits"))
def llama_zero_shot_classify(input_ids, embedding, rms_gain, lm_head,
                             label_tok_ids, label_seg,
                             num_labels, tv=512, n_splits=2):
    B, S = input_ids.shape
    H, V = lm_head.shape

    # ---- (synthetic) llama trunk: embed position 0 + final RMSNorm -------------
    # Only position 0 of the per-position label log-prob sums is consumed, so only
    # B rows are embedded / normalized (hoisted out of the vocab loop).
    ids0 = input_ids[:, 0]
    h = jnp.take(embedding, ids0, axis=0).astype(jnp.float32)              # (B, H)
    var = jnp.mean(h * h, axis=-1, keepdims=True)
    h = h * jax.lax.rsqrt(var + 1e-5) * rms_gain.reshape(1, H)

    # ---- exact per-label logit sums (tiny, f32, wrapper-side) ------------------
    # Gathering duplicate columns preserves token multiplicity.
    w_lab = jnp.take(lm_head, label_tok_ids, axis=1)                       # (H, n_tok)
    lab_logits = jnp.dot(h, w_lab, precision=jax.lax.Precision.HIGHEST)    # (B, n_tok)
    label_sums = jnp.dot(lab_logits, label_seg,
                         precision=jax.lax.Precision.HIGHEST)              # (B, L)
    counts = jnp.sum(label_seg, axis=0)                                    # (L,)

    # ---- pad vocab to a multiple of n_splits * tv -------------------------------
    chunk = n_splits * tv
    v_pad = ((V + chunk - 1) // chunk) * chunk
    w = lm_head if v_pad == V else jnp.pad(lm_head, ((0, 0), (0, v_pad - V)))
    nk = v_pad // chunk                       # vocab tiles per parallel split

    h_bf16 = h.astype(jnp.bfloat16)
    w_bf16 = w.astype(jnp.bfloat16)
    # TODO(synk): for another ~2x on the memory-bound roofline stream lm_head as
    # int8 (v5e/v6e MXU-native) or fp8 (v7x) with per-column scales.

    def lse_kernel(h_ref, w_ref, m_out_ref, s_out_ref, m_ref, s_ref):
        p = pl.program_id(0)                  # parallel vocab split (per TC on v7x)
        k = pl.program_id(1)                  # vocab tile within the split

        @pl.when(k == 0)
        def _():
            m_ref[...] = jnp.full(m_ref.shape, -1e30, dtype=jnp.float32)
            s_ref[...] = jnp.zeros_like(s_ref)

        # (B, tv) logits tile: bf16 streams, f32 MXU accumulation.
        logits = jnp.dot(h_ref[...], w_ref[...],
                         preferred_element_type=jnp.float32)

        # Mask padded vocab columns to -inf so they never enter the denominator.
        col0 = (p * nk + k) * tv
        cols = col0 + jax.lax.broadcasted_iota(jnp.int32, logits.shape, 1)
        logits = jnp.where(cols < V, logits, -jnp.inf)

        # Online logsumexp over the vocab axis.  These VPU/XLU/EUP ops are free
        # filler next to the dominant weight-stream DMA / MXU.
        m_prev = m_ref[...]
        m_new = jnp.maximum(m_prev, jnp.max(logits, axis=-1, keepdims=True))
        s_ref[...] = (s_ref[...] * jnp.exp(m_prev - m_new)
                      + jnp.sum(jnp.exp(logits - m_new), axis=-1, keepdims=True))
        m_ref[...] = m_new

        @pl.when(k == nk - 1)
        def _():
            m_out_ref[0] = m_ref[...]
            s_out_ref[0] = s_ref[...]

    # VMEM budget: the double-buffered bf16 weight tile dominates.  Clamp to the
    # v7x 64 MiB physical cap; raise above v5e's 16 MiB default scoped limit.
    w_tile_bufs = 2 * H * tv * 2
    misc = B * H * 2 + 2 * n_splits * B * 4 + (1 << 20)
    vmem_limit = int(min(64 * 1024 * 1024,
                         max(16 * 1024 * 1024, 2 * w_tile_bufs + misc)))

    m_part, s_part = pl.pallas_call(
        lse_kernel,
        out_shape=(jax.ShapeDtypeStruct((n_splits, B, 1), jnp.float32),
                   jax.ShapeDtypeStruct((n_splits, B, 1), jnp.float32)),
        grid_spec=pltpu.PrefetchScalarGridSpec(
            num_scalar_prefetch=0,
            grid=(n_splits, nk),
            in_specs=[
                pl.BlockSpec((B, H), lambda p, k: (0, 0)),               # h (resident)
                pl.BlockSpec((H, tv), lambda p, k: (0, p * nk + k)),     # lm_head tile
                # NOTE: pipeline_mode=pl.Buffered(3) on the weight spec is a cheap
                # knob if profiling shows exposed DMA at large tv (budget VMEM).
            ],
            out_specs=(
                pl.BlockSpec((1, B, 1), lambda p, k: (p, 0, 0)),
                pl.BlockSpec((1, B, 1), lambda p, k: (p, 0, 0)),
            ),
            scratch_shapes=[
                pltpu.VMEM((B, 1), jnp.float32),   # running max
                pltpu.VMEM((B, 1), jnp.float32),   # running sum of exp
            ],
        ),
        compiler_params=pltpu.CompilerParams(
            dimension_semantics=("parallel", "arbitrary"),
            vmem_limit_bytes=vmem_limit,
        ),
    )(h_bf16, w_bf16)

    # LSE merge across the parallel splits (robust to an all-padding split: s=0).
    m_all = jnp.max(m_part, axis=0)                                     # (B, 1)
    s_all = jnp.sum(s_part * jnp.exp(m_part - m_all[None]), axis=0)     # (B, 1)
    lse = m_all + jnp.log(s_all)                                        # (B, 1)

    # log_softmax identity: sum_t logp[b, t] = sum_t logits[b, t] - count * lse[b]
    out = label_sums - lse * counts.reshape(1, -1)                      # (B, L)
    return out[:, :num_labels]


def _reference(input_ids, embedding, rms_gain, lm_head, label_name_ids):
    # pure-JAX f32 reference mirroring the PyTorch forward
    h = jnp.take(embedding, input_ids, axis=0).astype(jnp.float32)      # (B, S, H)
    var = jnp.mean(h * h, axis=-1, keepdims=True)
    h = h * jax.lax.rsqrt(var + 1e-5) * rms_gain
    logits = jnp.einsum("bsh,hv->bsv", h, lm_head,
                        precision=jax.lax.Precision.HIGHEST)
    logp = jax.nn.log_softmax(logits, axis=-1)
    cols = []
    for ids in label_name_ids:
        total = jnp.sum(logp[:, :, jnp.array(ids)], axis=-1)            # (B, S)
        cols.append(total[:, 0])
    return jnp.stack(cols, axis=-1)                                     # (B, L)


if __name__ == "__main__":
    # Small demo shapes; V is deliberately NOT a tile multiple to exercise the
    # in-kernel padding mask.  H multiple of 128 for lane-dense tiles.
    B, S, H, V = 4, 8, 256, 1000
    num_labels = 3
    tv = 256          # demo-sized; default 512, sweep to 1024-2048 for real vocabs
    n_splits = 2      # uses both v7x TensorCores; neutral on v5e/v6e

    key = jax.random.PRNGKey(0)
    k_emb, k_head, k_ids = jax.random.split(key, 3)

    embedding = jax.random.normal(k_emb, (V, H), dtype=jnp.float32) * 0.05
    lm_head = jax.random.normal(k_head, (H, V), dtype=jnp.float32) * 0.05
    rms_gain = jnp.ones((H,), dtype=jnp.float32)
    input_ids = jax.random.randint(k_ids, (B, S), 0, V, dtype=jnp.int32)

    # Deterministic stand-in for tokenizer.encode(label) per label.
    # The duplicated token id (5) exercises multiplicity preservation.
    label_name_ids = [[3, 17], [42], [5, 99, 5]]
    flat = [t for ids in label_name_ids for t in ids]
    label_tok_ids = jnp.asarray(flat, dtype=jnp.int32)                  # (n_tok,)
    seg = np.zeros((len(flat), num_labels), dtype=np.float32)           # (n_tok, L)
    pos = 0
    for lbl, ids in enumerate(label_name_ids):
        for _ in ids:
            seg[pos, lbl] = 1.0
            pos += 1
    label_seg = jnp.asarray(seg)

    out = llama_zero_shot_classify(input_ids, embedding, rms_gain, lm_head,
                                   label_tok_ids, label_seg,
                                   num_labels=num_labels, tv=tv, n_splits=n_splits)
    out = jax.block_until_ready(out)

    ref = _reference(input_ids, embedding, rms_gain, lm_head, label_name_ids)
    # bf16 weight/activation stream in the LSE vs f32 reference -> modest tolerance.
    np.testing.assert_allclose(np.asarray(out), np.asarray(ref),
                               rtol=2e-2, atol=2e-2)
    print("KERNEL_OK")
</pallas_src>

<mosaic_0001>
module attributes {stable_mosaic.version = 11 : i64} {
  func.func @lse_kernel(%arg0: i32, %arg1: i32, %arg2: memref<4x256xbf16, #tpu.memory_space<vmem>>, %arg3: memref<256x256xbf16, #tpu.memory_space<vmem>>, %arg4: memref<1x4x1xf32, #tpu.memory_space<vmem>>, %arg5: memref<1x4x1xf32, #tpu.memory_space<vmem>>, %arg6: memref<4x1xf32, #tpu.memory_space<vmem>>, %arg7: memref<4x1xf32, #tpu.memory_space<vmem>>) attributes {dimension_semantics = [#tpu.dimension_semantics<parallel>, #tpu.dimension_semantics<arbitrary>], iteration_bounds = array<i64: 2, 2>, scalar_prefetch = 0 : i64, scratch_operands = 2 : i64, tpu.core_type = #tpu.core_type<tc>, window_params = [{pipeline_mode = #tpu.pipeline_mode<synchronous>, transform_indices = @transform_0, window_bounds = array<i64: 4, 256>}, {transform_indices = @transform_1, window_bounds = array<i64: 256, 256>}, {transform_indices = @transform_2, window_bounds = array<i64: 1, 4, 1>}, {transform_indices = @transform_3, window_bounds = array<i64: 1, 4, 1>}]} {
    %c0_i32 = arith.constant 0 : i32
    %0 = arith.cmpi eq, %arg1, %c0_i32 : i32
    %1 = arith.extui %0 : i1 to i32
    %c0_i32_0 = arith.constant 0 : i32
    %2 = arith.cmpi ne, %1, %c0_i32_0 : i32
    scf.if %2 {
      %cst_16 = arith.constant -1.000000e+30 : f32
      %35 = vector.broadcast %cst_16 : f32 to vector<4x1xf32>
      %c0_17 = arith.constant 0 : index
      %c0_18 = arith.constant 0 : index
      %36 = vector.load %arg6[%c0_17, %c0_18] : memref<4x1xf32, #tpu.memory_space<vmem>>, vector<4x1xf32>
      tpu.vector_store %arg6[%c0_17, %c0_18], %35 {strides = array<i32>} : memref<4x1xf32, #tpu.memory_space<vmem>>, vector<4x1xf32>,
      %cst_19 = arith.constant 0.000000e+00 : f32
      %37 = vector.broadcast %cst_19 : f32 to vector<4x1xf32>
      %c0_20 = arith.constant 0 : index
      %c0_21 = arith.constant 0 : index
      %38 = vector.load %arg7[%c0_20, %c0_21] : memref<4x1xf32, #tpu.memory_space<vmem>>, vector<4x1xf32>
      tpu.vector_store %arg7[%c0_20, %c0_21], %37 {strides = array<i32>} : memref<4x1xf32, #tpu.memory_space<vmem>>, vector<4x1xf32>,
    } else {
    }
    %c0 = arith.constant 0 : index
    %c0_1 = arith.constant 0 : index
    %3 = vector.load %arg2[%c0, %c0_1] : memref<4x256xbf16, #tpu.memory_space<vmem>>, vector<4x256xbf16>
    %c0_2 = arith.constant 0 : index
    %c0_3 = arith.constant 0 : index
    %4 = vector.load %arg3[%c0_2, %c0_3] : memref<256x256xbf16, #tpu.memory_space<vmem>>, vector<256x256xbf16>
    %cst = arith.constant dense<0.000000e+00> : vector<4x256xf32>
    %5 = tpu.matmul %3, %4, %cst {dimension_numbers = #tpu.dot_dimension_numbers<[1], [0], [0], [1], [0, 0, 1, 1], [], []>} : vector<4x256xbf16>, vector<256x256xbf16>, vector<4x256xf32> -> vector<4x256xf32>
    %c2_i32 = arith.constant 2 : i32
    %6 = arith.muli %arg0, %c2_i32 : i32
    %7 = arith.addi %6, %arg1 : i32
    %c256_i32 = arith.constant 256 : i32
    %8 = arith.muli %7, %c256_i32 : i32
    %9 = tpu.iota {dimensions = array<i32: 1>} : vector<4x256xi32>
    %10 = vector.broadcast %8 : i32 to vector<4x256xi32>
    %11 = arith.addi %10, %9 : vector<4x256xi32>
    %c1000_i32 = arith.constant 1000 : i32
    %12 = vector.broadcast %c1000_i32 : i32 to vector<4x256xi32>
    %13 = arith.cmpi slt, %11, %12 : vector<4x256xi32>
    %cst_4 = arith.constant 0xFF800000 : f32
    %14 = vector.broadcast %cst_4 : f32 to vector<4x256xf32>
    %15 = arith.select %13, %5, %14 : vector<4x256xi1>, vector<4x256xf32>
    %c0_5 = arith.constant 0 : index
    %c0_6 = arith.constant 0 : index
    %16 = vector.load %arg6[%c0_5, %c0_6] : memref<4x1xf32, #tpu.memory_space<vmem>>, vector<4x1xf32>
    %cst_7 = arith.constant dense<0xFF800000> : vector<4xf32>
    %17 = vector.multi_reduction <maximumf>, %15, %cst_7 [1] : vector<4x256xf32> to vector<4xf32>
    %18 = vector.shape_cast %17 : vector<4xf32> to vector<4x1xf32>
    %19 = arith.maximumf %16, %18 : vector<4x1xf32>
    %c0_8 = arith.constant 0 : index
    %c0_9 = arith.constant 0 : index
    %20 = vector.load %arg7[%c0_8, %c0_9] : memref<4x1xf32, #tpu.memory_space<vmem>>, vector<4x1xf32>
    %21 = arith.subf %16, %19 : vector<4x1xf32>
    %22 = math.exp %21 : vector<4x1xf32>
    %23 = arith.mulf %20, %22 : vector<4x1xf32>
    %24 = vector.broadcast %19 : vector<4x1xf32> to vector<4x256xf32>
    %25 = arith.subf %15, %24 : vector<4x256xf32>
    %26 = math.exp %25 : vector<4x256xf32>
    %cst_10 = arith.constant dense<0.000000e+00> : vector<4xf32>
    %27 = vector.multi_reduction <add>, %26, %cst_10 [1] : vector<4x256xf32> to vector<4xf32>
    %28 = vector.shape_cast %27 : vector<4xf32> to vector<4x1xf32>
    %29 = arith.addf %23, %28 : vector<4x1xf32>
    %c0_11 = arith.constant 0 : index
    %c0_12 = arith.constant 0 : index
    %30 = vector.load %arg7[%c0_11, %c0_12] : memref<4x1xf32, #tpu.memory_space<vmem>>, vector<4x1xf32>
    tpu.vector_store %arg7[%c0_11, %c0_12], %29 {strides = array<i32>} : memref<4x1xf32, #tpu.memory_space<vmem>>, vector<4x1xf32>,
    %c0_13 = arith.constant 0 : index
    %c0_14 = arith.constant 0 : index
    %31 = vector.load %arg6[%c0_13, %c0_14] : memref<4x1xf32, #tpu.memory_space<vmem>>, vector<4x1xf32>
    tpu.vector_store %arg6[%c0_13, %c0_14], %19 {strides = array<i32>} : memref<4x1xf32, #tpu.memory_space<vmem>>, vector<4x1xf32>,
    %c1_i32 = arith.constant 1 : i32
    %32 = arith.cmpi eq, %arg1, %c1_i32 : i32
    %33 = arith.extui %32 : i1 to i32
    %c0_i32_15 = arith.constant 0 : i32
    %34 = arith.cmpi ne, %33, %c0_i32_15 : i32
    scf.if %34 {
      %c0_16 = arith.constant 0 : index
      %c0_17 = arith.constant 0 : index
      %35 = vector.load %arg6[%c0_16, %c0_17] : memref<4x1xf32, #tpu.memory_space<vmem>>, vector<4x1xf32>
      %c0_18 = arith.constant 0 : index
      %c0_19 = arith.constant 0 : index
      %c0_20 = arith.constant 0 : index
      %36 = vector.load %arg4[%c0_18, %c0_19, %c0_20] : memref<1x4x1xf32, #tpu.memory_space<vmem>>, vector<1x4x1xf32>
      %37 = vector.shape_cast %36 : vector<1x4x1xf32> to vector<4x1xf32>
      %38 = vector.shape_cast %35 : vector<4x1xf32> to vector<1x4x1xf32>
      tpu.vector_store %arg4[%c0_18, %c0_19, %c0_20], %38 {strides = array<i32>} : memref<1x4x1xf32, #tpu.memory_space<vmem>>, vector<1x4x1xf32>,
      %c0_21 = arith.constant 0 : index
      %c0_22 = arith.constant 0 : index
      %39 = vector.load %arg7[%c0_21, %c0_22] : memref<4x1xf32, #tpu.memory_space<vmem>>, vector<4x1xf32>
      %c0_23 = arith.constant 0 : index
      %c0_24 = arith.constant 0 : index
      %c0_25 = arith.constant 0 : index
      %40 = vector.load %arg5[%c0_23, %c0_24, %c0_25] : memref<1x4x1xf32, #tpu.memory_space<vmem>>, vector<1x4x1xf32>
      %41 = vector.shape_cast %40 : vector<1x4x1xf32> to vector<4x1xf32>
      %42 = vector.shape_cast %39 : vector<4x1xf32> to vector<1x4x1xf32>
      tpu.vector_store %arg5[%c0_23, %c0_24, %c0_25], %42 {strides = array<i32>} : memref<1x4x1xf32, #tpu.memory_space<vmem>>, vector<1x4x1xf32>,
    } else {
    }
    return
  }
  func.func @transform_0(%arg0: i32, %arg1: i32) -> (i32, i32) {
    %c0_i32 = arith.constant 0 : i32
    %c0_i32_0 = arith.constant 0 : i32
    %c0_i32_1 = arith.constant 0 : i32
    return %c0_i32, %c0_i32_0 : i32, i32
  }
  func.func @transform_1(%arg0: i32, %arg1: i32) -> (i32, i32) {
    %c2_i32 = arith.constant 2 : i32
    %0 = arith.muli %arg0, %c2_i32 : i32
    %1 = arith.addi %0, %arg1 : i32
    %c0_i32 = arith.constant 0 : i32
    %c0_i32_0 = arith.constant 0 : i32
    return %c0_i32, %1 : i32, i32
  }
  func.func @transform_2(%arg0: i32, %arg1: i32) -> (i32, i32, i32) {
    %c0_i32 = arith.constant 0 : i32
    %c0_i32_0 = arith.constant 0 : i32
    %c0_i32_1 = arith.constant 0 : i32
    return %arg0, %c0_i32, %c0_i32_0 : i32, i32, i32
  }
  func.func @transform_3(%arg0: i32, %arg1: i32) -> (i32, i32, i32) {
    %c0_i32 = arith.constant 0 : i32
    %c0_i32_0 = arith.constant 0 : i32
    %c0_i32_1 = arith.constant 0 : i32
    return %arg0, %c0_i32, %c0_i32_0 : i32, i32, i32
  }
}

</mosaic_0001>

<bundles_post_ra>
// kernel: llama_zero_shot_classify.1
= control target key start
LH: loop header
LB: loop body
LE: loop exit
PB: predicated region body
PF: predicated region fallthrough
CT: control target
= control target key end

     0   :  { %s1102_s12 = smov 0   ;;  %s1104_s13 = smov 0   ;;  %s1347_s0 = inlined_call_operand.vmem [shape: bf16[4,256], index: 0, kind: input, shape index: {}]   ;;  %s1348_s1 = inlined_call_operand.vmem [shape: bf16[256,1024], index: 1, kind: input, shape index: {}]   ;;  %s1349_s2 = inlined_call_operand.vmem [shape: f32[2,4,1], index: 2, kind: output, shape index: {0}]   ;;  %s1350_s3 = inlined_call_operand.vmem [shape: f32[2,4,1], index: 3, kind: output, shape index: {1}]  }
   0x1   :  { %s1106_s14 = smov 0   ;;  %s1108_s15 = smov 0  }
   0x2   :  { %s1110_s16 = smov 0   ;;  %s1112_s17 = smov 0  }
   0x3   :  { %s1114_s18 = smov 0  }
   0x4 LB: > { %s23_s19 = sadd.s32 1, %s1069_s16  ;;  %s26_s20 = sadd.s32 1, %s1073_s17  ;;  %s1077_s18 = sphi %s1114_s18, %s14_s18   ;;  %s1073_s17 = sphi %s1112_s17, %s1356_s17   ;;  %s1069_s16 = sphi %s1110_s16, %s1355_s16   ;;  %s1065_s15 = sphi %s1108_s15, %s1354_s15   ;;  %s1061_s14 = sphi %s1106_s14, %s1353_s14   ;;  %s1057_s13 = sphi %s1104_s13, %s1352_s13   ;;  %s1053_s12 = sphi %s1102_s12, %s1351_s12  }
   0x5   : > { %p24_p0 = scmp.ge.s32.totalorder %s23_s19, 2  ;;  %p65_p1 = scmp.ne.s32.totalorder %s1057_s13, %s1053_s12 }
   0x6   : > { %p66_p2 = scmp.eq.s32.totalorder %s1077_s18, 0  ;;  %s778_s21 = sshll.u32 %s1073_s17, 1 }
   0x7   : > { %s1358_s19 = smov (%p24_p0, %s23_s19), 0  ;;  %s1360_s20 = smov (!%p24_p0, %s26_s20), %s1073_s17 }
   0x8   : > { %p28_p3 = scmp.ge.s32.totalorder %s1360_s20, 2  ;;  %p67_p4 = por %p66_p2, %p65_p1 }
   0x9   : > { %s52_s22 = sadd.s32 %s1069_s16, %s778_s21  ;;  %s58_s26 = sadd.s32 1, %s1057_s13 }
   0xa   : > { %s1362_s20 = smov (%p28_p3, %s1360_s20), 0  ;;  %p781_p6 = scmp.ge.s32.totalorder %s1077_s18, 4 }
   0xb   : > { %s779_s23 = sshll.u32 %s1362_s20, 1 }
   0xc   : > { %s54_s24 = sadd.s32 %s779_s23, %s1358_s19  ;;  %146 = sbr.rel (%p781_p6) target bundleno = 53 (0x35), region = 20 }
   0xd   : > { %s55_s25 = ssub.s32 %s52_s22, %s54_s24 }
   0xe   : > { %p56_p5 = scmp.eq.s32.totalorder %s55_s25, 0 }
  0x10   : > { %s1153_s27 = scalar_select %p56_p5, %s1057_s13, %s58_s26  }
  0x11   : > { %149 = sbr.rel (!%p67_p4) target bundleno = 53 (0x35), region = 24  ;;  %s151_s28 = sand.u32 (%p67_p4), 1, %s1057_s13  }
  0x12   : > { %s924_s29 = sshll.u32 (%p67_p4), %s52_s22, 3  ;;  %s782_s30 = sshll.u32 (%p67_p4), %s151_s28, 8 }
  0x13   : > { %s1160_s6 = scalar_lea.vmem (%p67_p4), %s1348_s1, %s924_s29  ;;  %s1165_s7 = scalar_lea.vmem (%p67_p4), [#allocation4], %s782_s30 }
  0x14   : > { %v249_v0 = vld [vmem:[%s1160_s6] sm:$0xff] (%p67_p4) }
  0x15   : > { %v251_v1 = vld [vmem:[%s1160_s6 + $0x20] sm:$0xff] (%p67_p4)  ;;  %250 = vst [vmem:[%s1165_s7] sm:$0xff] (%p67_p4), %v249_v0 }
  0x16   : > { %v253_v2 = vld [vmem:[%s1160_s6 + $0x40] sm:$0xff]  ;;  %252 = vst [vmem:[%s1165_s7 + $0x8] sm:$0xff] %v251_v1 }
  0x17   : > { %v255_v3 = vld [vmem:[%s1160_s6 + $0x60] sm:$0xff]  ;;  %254 = vst [vmem:[%s1165_s7 + $0x10] sm:$0xff] %v253_v2 }
  0x18   : > { %v257_v4 = vld [vmem:[%s1160_s6 + $0x80] sm:$0xff]  ;;  %256 = vst [vmem:[%s1165_s7 + $0x18] sm:$0xff] %v255_v3 }
  0x19   : > { %v259_v5 = vld [vmem:[%s1160_s6 + $0xa0] sm:$0xff]  ;;  %258 = vst [vmem:[%s1165_s7 + $0x20] sm:$0xff] %v257_v4 }
  0x1a   : > { %v261_v6 = vld [vmem:[%s1160_s6 + $0xc0] sm:$0xff]  ;;  %260 = vst [vmem:[%s1165_s7 + $0x28] sm:$0xff] %v259_v5 }
  0x1b   : > { %v263_v7 = vld [vmem:[%s1160_s6 + $0xe0] sm:$0xff]  ;;  %262 = vst [vmem:[%s1165_s7 + $0x30] sm:$0xff] %v261_v6 }
  0x1c   : > { %v265_v8 = vld [vmem:[%s1160_s6 + $0x100] sm:$0xff]  ;;  %264 = vst [vmem:[%s1165_s7 + $0x38] sm:$0xff] %v263_v7 }
  0x1d   : > { %v267_v9 = vld [vmem:[%s1160_s6 + $0x120] sm:$0xff]  ;;  %266 = vst [vmem:[%s1165_s7 + $0x40] sm:$0xff] %v265_v8 }
  0x1e   : > { %v269_v10 = vld [vmem:[%s1160_s6 + $0x140] sm:$0xff]  ;;  %268 = vst [vmem:[%s1165_s7 + $0x48] sm:$0xff] %v267_v9 }
  0x1f   : > { %v271_v11 = vld [vmem:[%s1160_s6 + $0x160] sm:$0xff]  ;;  %270 = vst [vmem:[%s1165_s7 + $0x50] sm:$0xff] %v269_v10 }
  0x20   : > { %v273_v12 = vld [vmem:[%s1160_s6 + $0x180] sm:$0xff]  ;;  %272 = vst [vmem:[%s1165_s7 + $0x58] sm:$0xff] %v271_v11 }
  0x21   : > { %v275_v13 = vld [vmem:[%s1160_s6 + $0x1a0] sm:$0xff]  ;;  %274 = vst [vmem:[%s1165_s7 + $0x60] sm:$0xff] %v273_v12 }
  0x22   : > { %v277_v14 = vld [vmem:[%s1160_s6 + $0x1c0] sm:$0xff]  ;;  %276 = vst [vmem:[%s1165_s7 + $0x68] sm:$0xff] %v275_v13 }
  0x23   : > { %v279_v15 = vld [vmem:[%s1160_s6 + $0x1e0] sm:$0xff]  ;;  %278 = vst [vmem:[%s1165_s7 + $0x70] sm:$0xff] %v277_v14 }
  0x24   : > { %v281_v16 = vld [vmem:[%s1160_s6 + $0x200] sm:$0xff]  ;;  %280 = vst [vmem:[%s1165_s7 + $0x78] sm:$0xff] %v279_v15 }
  0x25   : > { %v283_v17 = vld [vmem:[%s1160_s6 + $0x220] sm:$0xff]  ;;  %282 = vst [vmem:[%s1165_s7 + $0x80] sm:$0xff] %v281_v16 }
  0x26   : > { %v285_v18 = vld [vmem:[%s1160_s6 + $0x240] sm:$0xff]  ;;  %284 = vst [vmem:[%s1165_s7 + $0x88] sm:$0xff] %v283_v17 }
  0x27   : > { %v287_v19 = vld [vmem:[%s1160_s6 + $0x260] sm:$0xff]  ;;  %286 = vst [vmem:[%s1165_s7 + $0x90] sm:$0xff] %v285_v18 }
  0x28   : > { %v289_v20 = vld [vmem:[%s1160_s6 + $0x280] sm:$0xff]  ;;  %288 = vst [vmem:[%s1165_s7 + $0x98] sm:$0xff] %v287_v19 }
  0x29   : > { %v291_v21 = vld [vmem:[%s1160_s6 + $0x2a0] sm:$0xff]  ;;  %290 = vst [vmem:[%s1165_s7 + $0xa0] sm:$0xff] %v289_v20 }
  0x2a   : > { %v293_v22 = vld [vmem:[%s1160_s6 + $0x2c0] sm:$0xff]  ;;  %292 = vst [vmem:[%s1165_s7 + $0xa8] sm:$0xff] %v291_v21 }
  0x2b   : > { %v295_v23 = vld [vmem:[%s1160_s6 + $0x2e0] sm:$0xff]  ;;  %294 = vst [vmem:[%s1165_s7 + $0xb0] sm:$0xff] %v293_v22 }
  0x2c   : > { %v297_v24 = vld [vmem:[%s1160_s6 + $0x300] sm:$0xff]  ;;  %296 = vst [vmem:[%s1165_s7 + $0xb8] sm:$0xff] %v295_v23 }
  0x2d   : > { %v299_v25 = vld [vmem:[%s1160_s6 + $0x320] sm:$0xff]  ;;  %298 = vst [vmem:[%s1165_s7 + $0xc0] sm:$0xff] %v297_v24 }
  0x2e   : > { %v301_v26 = vld [vmem:[%s1160_s6 + $0x340] sm:$0xff]  ;;  %300 = vst [vmem:[%s1165_s7 + $0xc8] sm:$0xff] %v299_v25 }
  0x2f   : > { %v303_v27 = vld [vmem:[%s1160_s6 + $0x360] sm:$0xff]  ;;  %302 = vst [vmem:[%s1165_s7 + $0xd0] sm:$0xff] %v301_v26 }
  0x30   : > { %v305_v28 = vld [vmem:[%s1160_s6 + $0x380] sm:$0xff]  ;;  %304 = vst [vmem:[%s1165_s7 + $0xd8] sm:$0xff] %v303_v27 }
  0x31   : > { %v307_v29 = vld [vmem:[%s1160_s6 + $0x3a0] sm:$0xff]  ;;  %306 = vst [vmem:[%s1165_s7 + $0xe0] sm:$0xff] %v305_v28 }
  0x32   : > { %v309_v30 = vld [vmem:[%s1160_s6 + $0x3c0] sm:$0xff]  ;;  %308 = vst [vmem:[%s1165_s7 + $0xe8] sm:$0xff] %v307_v29 }
  0x33   : > { %v311_v31 = vld [vmem:[%s1160_s6 + $0x3e0] sm:$0xff]  ;;  %310 = vst [vmem:[%s1165_s7 + $0xf0] sm:$0xff] %v309_v30 }
  0x34   : > { %312 = vst [vmem:[%s1165_s7 + $0xf8] sm:$0xff] %v311_v31 }
  0x35 PF: > { %p786_p7 = scmp.ge.s32.totalorder %s1077_s18, 1  ;;  %p317_p8 = scmp.lt.s32.totalorder %s1077_s18, 5 }
  0x37   : > { %p318_p9 = pnand %p786_p7, %p317_p8 }
  0x38   : > { %s324_s8 = sand.u32 (!%p318_p9), 1, %s1053_s12   ;;  %p353_p10 = scmp.lt.s32.totalorder (!%p318_p9), %s1065_s15, 1 }
  0x39   : > { %321 = sbr.rel (%p318_p9) target bundleno = 620 (0x26c), region = 62  ;;  %s787_s9 = sshll.u32 (!%p318_p9), %s324_s8, 8 }
  0x3a   : > { %s1243_s28 = scalar_lea.vmem (!%p318_p9), [#allocation4], %s787_s9  ;;  %p790_p11 = scmp.ne.s32.totalorder (!%p318_p9), %s1061_s14, 0 }
  0x3e   : > { %s354_s10 = scalar_select %p353_p10, %s1065_s15, 1 }
  0x3f   : > { %364 = sbr.rel (%p790_p11) target bundleno = 71 (0x47), region = 70 }
  0x40   : > { %s788_s11 = sshll.u32 %s354_s10, 2 }
  0x41   : > { %s1236_s23 = scalar_lea.vmem %s1349_s2, %s788_s11  ;;  %s1241_s26 = scalar_lea.vmem %s1350_s3, %s788_s11 }
  0x44   : > { %vm365_vm0 = vcmask 3072   ;;  %v1079_v32 = vmov -1e+30   ;;  %v1080_v33 = vmov 0.0  }
  0x45   : > { %366 = vst.msk [vmem:[#allocation2] sm:$0xf] %vm365_vm0, %v1079_v32 }
  0x46   : > { %367 = vst.msk [vmem:[#allocation3] sm:$0xf] %vm365_vm0, %v1080_v33 }
  0x47 PF: > { %v849_v34 = vld [vmem:[%s1243_s28 + $0x70] sm:$0xf]  ;;  %v940_v35 = vld [vmem:[%s1243_s28 + $0x74] sm:$0xf0]  ;;  %v939_v39 = vld [vmem:[%s1243_s28 + $0x74] sm:$0xf] }
  0x48   : > { %v913_v36 = vld [vmem:[%s1243_s28 + $0xf0] sm:$0xf]  ;;  %v850_v37 = vor.u32 %v940_v35, %v849_v34  ;;  %v956_v38 = vld [vmem:[%s1243_s28 + $0xf4] sm:$0xf0]  ;;  %v851_v40 = vld [vmem:[%s1243_s28 + $0x78] sm:$0xf0] }
  0x49   : > { %v914_v41 = vor.u32 %v956_v38, %v913_v36  ;;  %v854_v42 = vor.u32 %v939_v39, %v851_v40  ;;  %v955_v43 = vld [vmem:[%s1243_s28 + $0xf4] sm:$0xf]  ;;  %v915_v44 = vld [vmem:[%s1243_s28 + $0xf8] sm:$0xf0]  ;;  %v841_v45 = vld [vmem:[%s1243_s28 + $0x60] sm:$0xf] }
  0x4a   : > { %567 = vmatpush.bf16.msra.mxu0 %v850_v37  ;;  %v918_v46 = vor.u32 %v955_v43, %v915_v44  ;;  %v938_v47 = vld [vmem:[%s1243_s28 + $0x64] sm:$0xf0]  ;;  %v905_v48 = vld [vmem:[%s1243_s28 + $0xe0] sm:$0xf]  ;;  %v937_v52 = vld [vmem:[%s1243_s28 + $0x64] sm:$0xf] }
  0x4b   : > { %v954_v49 = vld [vmem:[%s1243_s28 + $0xe4] sm:$0xf0]  ;;  %580 = vmatpush.bf16.msra.mxu1 %v914_v41  ;;  %593 = vmatpush.bf16.msra.mxu2 %v854_v42  ;;  %v842_v50 = vor.u32 %v938_v47, %v841_v45  ;;  %v843_v53 = vld [vmem:[%s1243_s28 + $0x68] sm:$0xf0]  ;;  %v953_v54 = vld [vmem:[%s1243_s28 + $0xe4] sm:$0xf] }
  0x4c   : > { %v906_v51 = vor.u32 %v954_v49, %v905_v48  ;;  %606 = vmatpush.bf16.msra.mxu3 %v918_v46  ;;  %v846_v55 = vor.u32 %v937_v52, %v843_v53  ;;  %v907_v56 = vld [vmem:[%s1243_s28 + $0xe8] sm:$0xf0]  ;;  %v833_v57 = vld [vmem:[%s1243_s28 + $0x50] sm:$0xf]  ;;  %v936_v58 = vld [vmem:[%s1243_s28 + $0x54] sm:$0xf0] }
  0x4d   : > { %v910_v59 = vor.u32 %v953_v54, %v907_v56  ;;  %v897_v60 = vld [vmem:[%s1243_s28 + $0xd0] sm:$0xf]  ;;  %v952_v61 = vld [vmem:[%s1243_s28 + $0xd4] sm:$0xf0]  ;;  %v935_v62 = vld [vmem:[%s1243_s28 + $0x54] sm:$0xf]  ;;  %v834_v63 = vor.u32 %v936_v58, %v833_v57 }
  0x4e   : > { %568 = vmatpush.bf16.msra.mxu0 %v842_v50  ;;  %v835_v0 = vld [vmem:[%s1243_s28 + $0x58] sm:$0xf0]  ;;  %v951_v1 = vld [vmem:[%s1243_s28 + $0xd4] sm:$0xf]  ;;  %v898_v3 = vor.u32 %v952_v61, %v897_v60  ;;  %v825_v5 = vld [vmem:[%s1243_s28 + $0x40] sm:$0xf] }
  0x4f   : > { %v899_v2 = vld [vmem:[%s1243_s28 + $0xd8] sm:$0xf0]  ;;  %581 = vmatpush.bf16.msra.mxu1 %v906_v51  ;;  %594 = vmatpush.bf16.msra.mxu2 %v846_v55  ;;  %v838_v4 = vor.u32 %v935_v62, %v835_v0  ;;  %v934_v6 = vld [vmem:[%s1243_s28 + $0x44] sm:$0xf0]  ;;  %v889_v7 = vld [vmem:[%s1243_s28 + $0xc0] sm:$0xf] }
  0x50   : > { %607 = vmatpush.bf16.msra.mxu3 %v910_v59  ;;  %v902_v8 = vor.u32 %v951_v1, %v899_v2  ;;  %v950_v9 = vld [vmem:[%s1243_s28 + $0xc4] sm:$0xf0]  ;;  %v933_v10 = vld [vmem:[%s1243_s28 + $0x44] sm:$0xf]  ;;  %v827_v11 = vld [vmem:[%s1243_s28 + $0x48] sm:$0xf0]  ;;  %v826_v14 = vor.u32 %v934_v6, %v825_v5  ;;  %v622_v5 = vlaneseq }
  0x51   : > { %v949_v12 = vld [vmem:[%s1243_s28 + $0xc4] sm:$0xf]  ;;  %v891_v13 = vld [vmem:[%s1243_s28 + $0xc8] sm:$0xf0]  ;;  %v890_v15 = vor.u32 %v950_v9, %v889_v7  ;;  %v830_v16 = vor.u32 %v933_v10, %v827_v11  ;;  %v817_v17 = vld [vmem:[%s1243_s28 + $0x30] sm:$0xf] }
  0x52   : > { %569 = vmatpush.bf16.msra.mxu0 %v834_v63  ;;  %v932_v18 = vld [vmem:[%s1243_s28 + $0x34] sm:$0xf0]  ;;  %v881_v19 = vld [vmem:[%s1243_s28 + $0xb0] sm:$0xf]  ;;  %v894_v20 = vor.u32 %v949_v12, %v891_v13  ;;  %v931_v22 = vld [vmem:[%s1243_s28 + $0x34] sm:$0xf] }
  0x53   : > { %582 = vmatpush.bf16.msra.mxu1 %v898_v3  ;;  %595 = vmatpush.bf16.msra.mxu2 %v838_v4  ;;  %v948_v21 = vld [vmem:[%s1243_s28 + $0xb4] sm:$0xf0]  ;;  %v819_v23 = vld [vmem:[%s1243_s28 + $0x38] sm:$0xf0]  ;;  %v947_v24 = vld [vmem:[%s1243_s28 + $0xb4] sm:$0xf]  ;;  %v818_v26 = vor.u32 %v932_v18, %v817_v17 }
  0x54   : > { %608 = vmatpush.bf16.msra.mxu3 %v902_v8  ;;  %v883_v25 = vld [vmem:[%s1243_s28 + $0xb8] sm:$0xf0]  ;;  %v882_v27 = vor.u32 %v948_v21, %v881_v19  ;;  %v822_v28 = vor.u32 %v931_v22, %v819_v23  ;;  %v809_v29 = vld [vmem:[%s1243_s28 + $0x20] sm:$0xf]  ;;  %v930_v30 = vld [vmem:[%s1243_s28 + $0x24] sm:$0xf0] }
  0x55   : > { %v873_v31 = vld [vmem:[%s1243_s28 + $0xa0] sm:$0xf]  ;;  %v886_v32 = vor.u32 %v947_v24, %v883_v25  ;;  %v946_v33 = vld [vmem:[%s1243_s28 + $0xa4] sm:$0xf0]  ;;  %v929_v34 = vld [vmem:[%s1243_s28 + $0x24] sm:$0xf]  ;;  %v810_v38 = vor.u32 %v930_v30, %v809_v29 }
  0x56   : > { %570 = vmatpush.bf16.msra.mxu0 %v826_v14  ;;  %v811_v35 = vld [vmem:[%s1243_s28 + $0x28] sm:$0xf0]  ;;  %v945_v36 = vld [vmem:[%s1243_s28 + $0xa4] sm:$0xf]  ;;  %v801_v39 = vld [vmem:[%s1243_s28 + $0x10] sm:$0xf]  ;;  %v874_v40 = vor.u32 %v946_v33, %v873_v31 }
  0x57   : > { %583 = vmatpush.bf16.msra.mxu1 %v890_v15  ;;  %596 = vmatpush.bf16.msra.mxu2 %v830_v16  ;;  %v875_v37 = vld [vmem:[%s1243_s28 + $0xa8] sm:$0xf0]  ;;  %v814_v41 = vor.u32 %v929_v34, %v811_v35  ;;  %v928_v42 = vld [vmem:[%s1243_s28 + $0x14] sm:$0xf0]  ;;  %v865_v43 = vld [vmem:[%s1243_s28 + $0x90] sm:$0xf] }
  0x58   : > { %609 = vmatpush.bf16.msra.mxu3 %v894_v20  ;;  %v944_v44 = vld [vmem:[%s1243_s28 + $0x94] sm:$0xf0]  ;;  %v878_v45 = vor.u32 %v945_v36, %v875_v37  ;;  %v927_v46 = vld [vmem:[%s1243_s28 + $0x14] sm:$0xf]  ;;  %v803_v47 = vld [vmem:[%s1243_s28 + $0x18] sm:$0xf0]  ;;  %v802_v51 = vor.u32 %v928_v42, %v801_v39 }
  0x59   : > { %v368_v48 = vld [vmem:[%s1347_s0] sm:$0xf]  ;;  %v943_v49 = vld [vmem:[%s1243_s28 + $0x94] sm:$0xf]  ;;  %v867_v50 = vld [vmem:[%s1243_s28 + $0x98] sm:$0xf0]  ;;  %v866_v52 = vor.u32 %v944_v44, %v865_v43  ;;  %v806_v53 = vor.u32 %v927_v46, %v803_v47 }
  0x5a   : > { %571 = vmatpush.bf16.msra.mxu0 %v818_v26  ;;  %402 = vst [vmem:[#allocation1] ss:$4 sm:$0xff] %v368_v48  ;;  %v793_v54 = vld [vmem:[%s1243_s28] sm:$0xf]  ;;  %v926_v55 = vld [vmem:[%s1243_s28 + $0x4] sm:$0xf0]  ;;  %v870_v57 = vor.u32 %v943_v49, %v867_v50 }
  0x5b   : > { %584 = vmatpush.bf16.msra.mxu1 %v882_v27  ;;  %597 = vmatpush.bf16.msra.mxu2 %v822_v28  ;;  %v857_v56 = vld [vmem:[%s1243_s28 + $0x80] sm:$0xf]  ;;  %v942_v58 = vld [vmem:[%s1243_s28 + $0x84] sm:$0xf0]  ;;  %v925_v59 = vld [vmem:[%s1243_s28 + $0x4] sm:$0xf]  ;;  %v794_v63 = vor.u32 %v926_v55, %v793_v54 }
  0x5c   : > { %610 = vmatpush.bf16.msra.mxu3 %v886_v32  ;;  %v795_v60 = vld [vmem:[%s1243_s28 + $0x8] sm:$0xf0]  ;;  %v941_v61 = vld [vmem:[%s1243_s28 + $0x84] sm:$0xf]  ;;  %v858_v0 = vor.u32 %v942_v58, %v857_v56  ;;  %s919_s30 = sshll.u32 %s1065_s15, 1  ;;  %v623_v6 = vand.u32 127, %v622_v5 }
  0x5d   : > { %v859_v62 = vld [vmem:[%s1243_s28 + $0x88] sm:$0xf0]  ;;  %v798_v1 = vor.u32 %v925_v59, %v795_v60  ;;  %s620_s4 = sadd.s32 %s1061_s14, %s919_s30  ;;  %vm633_vm2 = vcmask 1043456   ;;  %v1081_v26 = vmov 0   ;;  %v632_v27 = vld [vmem:[#allocation2] sm:$0xf] }
  0x5e   : > { %572 = vmatpush.bf16.msra.mxu0 %v810_v38  ;;  %v862_v2 = vor.u32 %v941_v61, %v859_v62  ;;  %s920_s5 = sshll.u32 %s620_s4, 8  ;;  %v624_v9 = vadd.s32 128, %v623_v6  ;;  %1016 = vset.pattern.permute.xlu0 %v1081_v26  ;;  %vm662_vm4 = vcmask 3072   ;;  %v640_v43 = vld [vmem:[#allocation3] sm:$0xf]  ;;  %p921_p12 = scmp.ne.s32.totalorder %s1061_s14, 1 }
  0x5f   : > { %585 = vmatpush.bf16.msra.mxu1 %v874_v40  ;;  %598 = vmatpush.bf16.msra.mxu2 %v814_v41  ;;  %v625_v7 = vstv %s920_s5 }
  0x60   : > { %611 = vmatpush.bf16.msra.mxu3 %v878_v45  ;;  %v626_v10 = vadd.s32 %v625_v7, %v623_v6  ;;  %v627_v13 = vadd.s32 %v625_v7, %v624_v9 }
  0x61   : > { %v403_v3 = vld.sshfl [vmem:[#allocation1] sm:$0xff pattern:$0x73625140]  ;;  %v404_v4 = vld.sshfl [vmem:[#allocation1 + $0x8] sm:$0xff pattern:$0x73625140] }
  0x62   : > { %573 = vmatpush.bf16.msra.mxu0 %v802_v51  ;;  %vm628_vm1 = vcmp.lt.s32.totalorder %v626_v10, 1000  ;;  %vm629_vm3 = vcmp.lt.s32.totalorder %v627_v13, 1000 }
  0x63   : > { %586 = vmatpush.bf16.msra.mxu1 %v866_v52  ;;  %599 = vmatpush.bf16.msra.mxu2 %v806_v53 }
  0x64   : > { %612 = vmatpush.bf16.msra.mxu3 %v870_v57 }
  0x66   : > { %574 = vmatpush.bf16.msra.mxu0 %v794_v63 }
  0x67   : > { %587 = vmatpush.bf16.msra.mxu1 %v858_v0  ;;  %600 = vmatpush.bf16.msra.mxu2 %v798_v1 }
  0x68   : > { %613 = vmatpush.bf16.msra.mxu3 %v862_v2 }
  0x69   : > { %575 = vmatmul.bf16.vlgmr.msra.gmra.mxu0 %v403_v3 }
  0x6a   : > { %588 = vmatmul.bf16.vlgmr.msra.gmra.mxu1 %v404_v4  ;;  %601 = vmatmul.bf16.vlgmr.msra.gmra.mxu2 %v403_v3 }
  0x6b   : > { %614 = vmatmul.bf16.vlgmr.msra.gmra.mxu3 %v404_v4 }
  0xe6   : > { %v576_v8 = vpop.f32.mrf.mxu0 }
  0xe7   : > { %v589_v11 = vpop.f32.mrf.mxu1 }
  0xe8   : > { %v590_v12 = vadd.f32 %v589_v11, %v576_v8 }
  0xea   : > { %v630_v15 = vsel %vm628_vm1, %v590_v12, -inf }
  0xeb   : > { %v634_v20 = vsel %vm633_vm2, %v630_v15, -inf }
  0xed   : > { %v602_v14 = vpop.f32.mrf.mxu2 }
  0xee   : > { %v615_v16 = vpop.f32.mrf.mxu3  ;;  %v578_v17 = vpop.f32.mrf.mxu0 }
  0xef   : > { %v616_v18 = vadd.f32 %v615_v16, %v602_v14  ;;  %v591_v19 = vpop.f32.mrf.mxu1 }
  0xf1   : > { %v631_v21 = vsel %vm629_vm3, %v616_v18, -inf }
  0xf2   : > { %v635_v22 = vsel %vm633_vm2, %v631_v21, -inf }
  0xf3   : > { %v636_v23 = vmax.f32 %v634_v20, %v635_v22 }
  0xf5   : > { %637 = vmax.xlane.f32.xlu0 %v636_v23  ;;  %v604_v24 = vpop.f32.mrf.mxu2 }
  0xf6   : > { %v617_v25 = vpop.f32.mrf.mxu3 }
 0x168   : > { %v638_v28 = vpop.xlane.xlu0 %637 }
 0x169   : > { %v639_v29 = vmax.f32 %v632_v27, %v638_v28 }
 0x16b   : > { %v641_v30 = vsub.f32 %v632_v27, %v639_v29  ;;  %664 = vst.msk [vmem:[#allocation2] sm:$0xf] %vm662_vm4, %v639_v29  ;;  %647 = vperm.xlu0 %1016, %v639_v29  }
 0x16d   : > { %v642_v41 = vmul.f32 1.442695, %v641_v30 }
 0x1dd   : > { %v648_v31 = vpop.permute.xlu0 %647 }
 0x1de   : > { %v650_v32 = vsub.f32 %v630_v15, %v648_v31  ;;  %v651_v33 = vsub.f32 %v631_v21, %v648_v31 }
 0x1e0   : > { %v652_v34 = vmul.f32 1.442695, %v650_v32  ;;  %v654_v35 = vmul.f32 1.442695, %v651_v33 }
 0x1e2   : > { %1017 = vpow2.f32 %v652_v34 }
 0x1e3   : > { %1019 = vpow2.f32 %v654_v35 }
 0x1e4   : > { %1021 = vpow2.f32 %v642_v41 }
 0x1e8   : > { %v1018_v36 = vpop.eup %1017 }
 0x1e9   : > { %v1020_v37 = vpop.eup %1019  ;;  %v656_v38 = vsel %vm633_vm2, %v1018_v36, 0.0 }
 0x1ea   : > { %v657_v39 = vsel %vm633_vm2, %v1020_v37, 0.0  ;;  %v1022_v42 = vpop.eup %1021 }
 0x1eb   : > { %v658_v40 = vadd.f32 %v657_v39, %v656_v38  ;;  %v644_v44 = vmul.f32 %v1022_v42, %v640_v43 }
 0x1ed   : > { %659 = vadd.xlane.f32.xlu1 %v658_v40 }
 0x25f   : > { %668 = sbr.rel (%p921_p12) target bundleno = 620 (0x26c), region = 74 }
 0x260   : > { %v660_v45 = vpop.xlane.xlu1 %659 }
 0x261   : > { %v661_v46 = vadd.f32 %v660_v45, %v644_v44 }
 0x263   : > { %663 = vst.msk [vmem:[#allocation3] sm:$0xf] %vm662_vm4, %v661_v46 }
 0x264   : > { %v669_v47 = vld [vmem:[#allocation2] sm:$0xf] }
 0x265   : > { %670 = vst.msk [vmem:[%s1236_s23] sm:$0xf] %vm662_vm4, %v669_v47 }
 0x26a   : > { %v671_v48 = vld [vmem:[#allocation3] sm:$0xf] }
 0x26b   : > { %672 = vst.msk [vmem:[%s1241_s26] sm:$0xf] %vm662_vm4, %v671_v48 }
 0x26c PF: > { %s14_s18 = sadd.s32 1, %s1077_s18   ;;  %s1351_s12 = smov %s1057_s13 }
 0x26d   : > { %p11_p13 = scmp.ge.s32.totalorder %s14_s18, 6   ;;  %s1352_s13 = smov %s1153_s27 }
 0x26e   : > { %s1353_s14 = smov %s1069_s16  ;;  %s1354_s15 = smov %s1073_s17 }
 0x26f   : > { %s1355_s16 = smov %s1358_s19  ;;  %s1356_s17 = smov %s1362_s20 }
 0x270   :  { %13 = sbr.rel (!%p11_p13) target bundleno = 4 (0x4), region = 121 }

</bundles_post_ra>
